<compile_context>
chip_gen: v5e
topology: v5e:2x2
jax: 0.10.0
libtpu: 0.0.40
codegen_flags: <defaults>
</compile_context>

<pallas_src>
import jax
import jax.numpy as jnp
from jax.experimental import pallas as pl
from jax.experimental.pallas import tpu as pltpu


# --------------------------------------------------------------------------
# Pallas kernels
# --------------------------------------------------------------------------
def _make_layer_kernel(pad, with_linear):
    """Fused multi-branch Conv1d + bias + ReLU for one layer (optionally + final Linear)."""

    def kernel(x_ref, w_ref, b_ref, *rest):
        if with_linear:
            lw_ref, lb_ref, o_ref = rest
        else:
            (o_ref,) = rest

        Bt, L, E = x_ref.shape          # (batch tile, seq, in channels)
        KE, C = w_ref.shape             # (K_max * E, C_total)
        K = KE // E

        x = x_ref[...]                  # (Bt, L, E) bf16
        if pad > 0:
            # Build the sequence halo in VMEM -- no HBM pad copy.
            z = jnp.zeros((Bt, pad, E), x.dtype)
            x = jnp.concatenate([z, x, z], axis=1)          # (Bt, L + 2*pad, E)

        # im2col: tap-major columns, then ONE long-contraction MXU matmul for all branches.
        cols = jnp.concatenate([x[:, k:k + L, :] for k in range(K)], axis=-1)   # (Bt, L, K*E)
        cols = cols.reshape(Bt * L, KE)                      # flatten B*L into the MXU M dim
        y = jnp.dot(cols, w_ref[...], preferred_element_type=jnp.float32)       # (Bt*L, C) f32
        h = jnp.maximum(y + b_ref[...], 0.0)                 # bias + ReLU on f32 accumulator

        if with_linear:
            O = o_ref.shape[-1]
            logits = jnp.dot(h.astype(lw_ref.dtype), lw_ref[...],
                             preferred_element_type=jnp.float32) + lb_ref[...]
            o_ref[...] = logits.reshape(Bt, L, O).astype(o_ref.dtype)
        else:
            o_ref[...] = h.reshape(Bt, L, C).astype(o_ref.dtype)

    return kernel


# --------------------------------------------------------------------------
# Wrappers
# --------------------------------------------------------------------------
def _batch_tile(B, max_tile=8):
    """Largest divisor of B that is <= max_tile (whole batch per step for small B)."""
    for bt in range(min(B, max_tile), 0, -1):
        if B % bt == 0:
            return bt
    return 1


def fused_conv_layer(x, w, b, pad):
    """x: (B, L, E) bf16, w: (K_max*E, C_total) bf16, b: (1, C_total) f32 -> (B, L, C_total) bf16."""
    B, L, E = x.shape
    KE, C = w.shape
    Bt = _batch_tile(B)
    return pl.pallas_call(
        _make_layer_kernel(pad, with_linear=False),
        out_shape=jax.ShapeDtypeStruct((B, L, C), jnp.bfloat16),
        grid=(B // Bt,),
        in_specs=[
            pl.BlockSpec((Bt, L, E), lambda i: (i, 0, 0)),
            pl.BlockSpec((KE, C), lambda i: (0, 0)),
            pl.BlockSpec((1, C), lambda i: (0, 0)),
        ],
        out_specs=pl.BlockSpec((Bt, L, C), lambda i: (i, 0, 0)),
        compiler_params=pltpu.CompilerParams(dimension_semantics=("parallel",)),
    )(x, w, b)


def fused_conv_layer_linear(x, w, b, lw, lb, pad):
    """Last conv layer with the final Linear fused into the epilogue. Returns (B, L, O) f32."""
    B, L, E = x.shape
    KE, C = w.shape
    O = lw.shape[1]
    Bt = _batch_tile(B)
    return pl.pallas_call(
        _make_layer_kernel(pad, with_linear=True),
        out_shape=jax.ShapeDtypeStruct((B, L, O), jnp.float32),
        grid=(B // Bt,),
        in_specs=[
            pl.BlockSpec((Bt, L, E), lambda i: (i, 0, 0)),
            pl.BlockSpec((KE, C), lambda i: (0, 0)),
            pl.BlockSpec((1, C), lambda i: (0, 0)),
            pl.BlockSpec((C, O), lambda i: (0, 0)),
            pl.BlockSpec((1, O), lambda i: (0, 0)),
        ],
        out_specs=pl.BlockSpec((Bt, L, O), lambda i: (i, 0, 0)),
        compiler_params=pltpu.CompilerParams(dimension_semantics=("parallel",)),
    )(x, w, b, lw, lb)


# --------------------------------------------------------------------------
# Parameter construction / fusion
# --------------------------------------------------------------------------
def build_params(key, vocab_size, emb_dim, layers_cfg, n_classes=2):
    """Raw per-branch f32 params (torch Conv1d weight (C,E,K) stored tap-major as (K,E,C))."""
    params = {}
    key, k_emb = jax.random.split(key)
    params["embedding"] = jax.random.normal(k_emb, (vocab_size, emb_dim), jnp.float32) * 0.1
    in_ch = emb_dim
    layers = []
    for layer_kernels in layers_cfg:
        layer = []
        out_total = 0
        for (out_ch, ksize) in layer_kernels:
            key, kw, kb = jax.random.split(key, 3)
            w = jax.random.normal(kw, (ksize, in_ch, out_ch), jnp.float32) * 0.1
            b = jax.random.normal(kb, (out_ch,), jnp.float32) * 0.1
            layer.append((w, b))
            out_total += out_ch
        layers.append(layer)
        in_ch = out_total
    params["layers"] = layers
    key, kw, kb = jax.random.split(key, 3)
    params["linear_w"] = jax.random.normal(kw, (in_ch, n_classes), jnp.float32) * 0.1
    params["linear_b"] = jax.random.normal(kb, (n_classes,), jnp.float32) * 0.1
    return params


def fuse_params(raw):
    """Zero-pad every branch to the layer's K_max tap grid and concat channels -> one (K_max*E, C_total)
    bf16 weight + one (1, C_total) f32 bias per layer, ready for the fused kernels."""
    fused = {"embedding": raw["embedding"].astype(jnp.bfloat16), "layers": []}
    for layer in raw["layers"]:
        k_sizes = [w.shape[0] for (w, _) in layer]
        assert all(k % 2 == 1 for k in k_sizes), \
            "only odd Conv1d kernel sizes supported (even K changes output length in PyTorch)"
        K_max = max(k_sizes)
        P = K_max // 2
        E = layer[0][0].shape[1]
        blocks, biases = [], []
        for (w, b) in layer:
            K_b, _, C_b = w.shape
            off = P - K_b // 2
            wk = jnp.zeros((K_max, E, C_b), jnp.float32).at[off:off + K_b].set(w)
            blocks.append(wk)
            biases.append(b)
        W = jnp.concatenate(blocks, axis=2).reshape(K_max * E, -1).astype(jnp.bfloat16)
        bias = jnp.concatenate(biases).reshape(1, -1).astype(jnp.float32)
        fused["layers"].append({"w": W, "b": bias, "pad": P})
    fused["linear_w"] = raw["linear_w"].astype(jnp.bfloat16)
    fused["linear_b"] = raw["linear_b"].reshape(1, -1).astype(jnp.float32)
    return fused


# --------------------------------------------------------------------------
# DECNN forward
# --------------------------------------------------------------------------
def decnn_forward(fused, src_ids):
    # Embedding lookup (gather) is glue -> plain JAX; bf16 table halves gather bytes.
    # Dropout: identity in inference mode.
    x = fused["embedding"][src_ids]                          # (B, L, E) bf16
    layers = fused["layers"]
    for layer in layers[:-1]:
        x = fused_conv_layer(x, layer["w"], layer["b"], layer["pad"])
    last = layers[-1]
    return fused_conv_layer_linear(x, last["w"], last["b"],
                                   fused["linear_w"], fused["linear_b"], last["pad"])


# --------------------------------------------------------------------------
# Pure-JAX f32 reference (for correctness check)
# --------------------------------------------------------------------------
def decnn_reference(params, src_ids):
    x = params["embedding"][src_ids]
    for layer in params["layers"]:
        outs = []
        for (w, b) in layer:
            K = w.shape[0]
            pad = K // 2
            xp = jnp.pad(x, ((0, 0), (pad, pad), (0, 0)))
            L = x.shape[1]
            acc = sum(jnp.einsum("ble,ec->blc", xp[:, k:k + L, :], w[k]) for k in range(K))
            outs.append(jnp.maximum(acc + b[None, None, :], 0.0))
        x = jnp.concatenate(outs, axis=-1)
    return jnp.einsum("blc,co->blo", x, params["linear_w"]) + params["linear_b"][None, None, :]


if __name__ == "__main__":
    key = jax.random.PRNGKey(0)
    B, L = 2, 16
    vocab_size, emb_dim = 50, 32
    # layers = [[(16,3),(16,5)], [(32,5)]]  -> channels 32 -> 32 -> linear to 2
    layers_cfg = [[(16, 3), (16, 5)], [(32, 5)]]

    key, k_ids = jax.random.split(key)
    src_ids = jax.random.randint(k_ids, (B, L), 0, vocab_size)

    raw = build_params(key, vocab_size, emb_dim, layers_cfg)
    fused = fuse_params(raw)

    logits = decnn_forward(fused, src_ids)
    jax.block_until_ready(logits)

    ref = decnn_reference(raw, src_ids)
    assert logits.shape == (B, L, 2), logits.shape
    err = float(jnp.max(jnp.abs(logits.astype(jnp.float32) - ref)))
    # bf16 MXU path vs f32 reference -> loosened tolerance.
    assert err < 5e-2, err

    print("KERNEL_OK")
</pallas_src>

<mosaic_0001>
module attributes {stable_mosaic.version = 11 : i64} {
  func.func @kernel(%arg0: i32, %arg1: memref<2x16x32xbf16, #tpu.memory_space<vmem>>, %arg2: memref<160x32xbf16, #tpu.memory_space<vmem>>, %arg3: memref<1x32xf32, #tpu.memory_space<vmem>>, %arg4: memref<2x16x32xbf16, #tpu.memory_space<vmem>>) attributes {dimension_semantics = [#tpu.dimension_semantics<parallel>], iteration_bounds = array<i64: 1>, scalar_prefetch = 0 : i64, scratch_operands = 0 : i64, tpu.core_type = #tpu.core_type<tc>, window_params = [{transform_indices = @transform_0, window_bounds = array<i64: 2, 16, 32>}, {pipeline_mode = #tpu.pipeline_mode<synchronous>, transform_indices = @transform_1, window_bounds = array<i64: 160, 32>}, {pipeline_mode = #tpu.pipeline_mode<synchronous>, transform_indices = @transform_2, window_bounds = array<i64: 1, 32>}, {transform_indices = @transform_3, window_bounds = array<i64: 2, 16, 32>}]} {
    %c0 = arith.constant 0 : index
    %c0_0 = arith.constant 0 : index
    %c0_1 = arith.constant 0 : index
    %0 = vector.load %arg1[%c0, %c0_0, %c0_1] : memref<2x16x32xbf16, #tpu.memory_space<vmem>>, vector<2x16x32xbf16>
    %cst = arith.constant 0.000000e+00 : bf16
    %1 = vector.broadcast %cst : bf16 to vector<2x2x32xbf16>
    %2 = tpu.concatenate %1, %0, %1 in 1 : vector<2x2x32xbf16>, vector<2x16x32xbf16>, vector<2x2x32xbf16> -> vector<2x20x32xbf16>
    %3 = vector.extract_strided_slice %2 {offsets = [0, 0, 0], sizes = [2, 16, 32], strides = [1, 1, 1]} : vector<2x20x32xbf16> to vector<2x16x32xbf16>
    %4 = vector.extract_strided_slice %2 {offsets = [0, 1, 0], sizes = [2, 16, 32], strides = [1, 1, 1]} : vector<2x20x32xbf16> to vector<2x16x32xbf16>
    %5 = vector.extract_strided_slice %2 {offsets = [0, 2, 0], sizes = [2, 16, 32], strides = [1, 1, 1]} : vector<2x20x32xbf16> to vector<2x16x32xbf16>
    %6 = vector.extract_strided_slice %2 {offsets = [0, 3, 0], sizes = [2, 16, 32], strides = [1, 1, 1]} : vector<2x20x32xbf16> to vector<2x16x32xbf16>
    %7 = vector.extract_strided_slice %2 {offsets = [0, 4, 0], sizes = [2, 16, 32], strides = [1, 1, 1]} : vector<2x20x32xbf16> to vector<2x16x32xbf16>
    %8 = tpu.concatenate %3, %4, %5, %6, %7 in 2 : vector<2x16x32xbf16>, vector<2x16x32xbf16>, vector<2x16x32xbf16>, vector<2x16x32xbf16>, vector<2x16x32xbf16> -> vector<2x16x160xbf16>
    %9 = vector.shape_cast %8 : vector<2x16x160xbf16> to vector<32x160xbf16>
    %c0_2 = arith.constant 0 : index
    %c0_3 = arith.constant 0 : index
    %10 = vector.load %arg2[%c0_2, %c0_3] : memref<160x32xbf16, #tpu.memory_space<vmem>>, vector<160x32xbf16>
    %cst_4 = arith.constant dense<0.000000e+00> : vector<32x32xf32>
    %11 = tpu.matmul %9, %10, %cst_4 {dimension_numbers = #tpu.dot_dimension_numbers<[1], [0], [0], [1], [0, 0, 1, 1], [], []>} : vector<32x160xbf16>, vector<160x32xbf16>, vector<32x32xf32> -> vector<32x32xf32>
    %c0_5 = arith.constant 0 : index
    %c0_6 = arith.constant 0 : index
    %12 = vector.load %arg3[%c0_5, %c0_6] : memref<1x32xf32, #tpu.memory_space<vmem>>, vector<1x32xf32>
    %13 = vector.broadcast %12 : vector<1x32xf32> to vector<32x32xf32>
    %14 = arith.addf %11, %13 : vector<32x32xf32>
    %cst_7 = arith.constant 0.000000e+00 : f32
    %15 = vector.broadcast %cst_7 : f32 to vector<32x32xf32>
    %16 = arith.maximumf %14, %15 : vector<32x32xf32>
    %17 = vector.shape_cast %16 : vector<32x32xf32> to vector<2x16x32xf32>
    %18 = arith.truncf %17 : vector<2x16x32xf32> to vector<2x16x32xbf16>
    %c0_8 = arith.constant 0 : index
    %c0_9 = arith.constant 0 : index
    %c0_10 = arith.constant 0 : index
    %19 = vector.load %arg4[%c0_8, %c0_9, %c0_10] : memref<2x16x32xbf16, #tpu.memory_space<vmem>>, vector<2x16x32xbf16>
    tpu.vector_store %arg4[%c0_8, %c0_9, %c0_10], %18 {strides = array<i32>} : memref<2x16x32xbf16, #tpu.memory_space<vmem>>, vector<2x16x32xbf16>,
    return
  }
  func.func @transform_0(%arg0: i32) -> (i32, i32, i32) {
    %c0_i32 = arith.constant 0 : i32
    %c0_i32_0 = arith.constant 0 : i32
    %c0_i32_1 = arith.constant 0 : i32
    return %arg0, %c0_i32, %c0_i32_0 : i32, i32, i32
  }
  func.func @transform_1(%arg0: i32) -> (i32, i32) {
    %c0_i32 = arith.constant 0 : i32
    %c0_i32_0 = arith.constant 0 : i32
    %c0_i32_1 = arith.constant 0 : i32
    return %c0_i32, %c0_i32_0 : i32, i32
  }
  func.func @transform_2(%arg0: i32) -> (i32, i32) {
    %c0_i32 = arith.constant 0 : i32
    %c0_i32_0 = arith.constant 0 : i32
    %c0_i32_1 = arith.constant 0 : i32
    return %c0_i32, %c0_i32_0 : i32, i32
  }
  func.func @transform_3(%arg0: i32) -> (i32, i32, i32) {
    %c0_i32 = arith.constant 0 : i32
    %c0_i32_0 = arith.constant 0 : i32
    %c0_i32_1 = arith.constant 0 : i32
    return %arg0, %c0_i32, %c0_i32_0 : i32, i32, i32
  }
}

</mosaic_0001>

<bundles_post_ra>
// kernel: tpu_custom_call.1
= control target key start
LH: loop header
LB: loop body
LE: loop exit
PB: predicated region body
PF: predicated region fallthrough
CT: control target
= control target key end

     0   :  { %vm32_vm0 = vcmask 1040384   ;;  %vm80_vm1 = vsmask.f32 6400  ;;  %s501_s0 = inlined_call_operand.vmem [shape: bf16[2,16,32], index: 0, kind: input, shape index: {}]   ;;  %s502_s1 = inlined_call_operand.vmem [shape: bf16[160,32], index: 1, kind: input, shape index: {}]   ;;  %s503_s2 = inlined_call_operand.vmem [shape: f32[1,32], index: 2, kind: input, shape index: {}]   ;;  %s504_s3 = inlined_call_operand.hbm [shape: bf16[2,16,32], index: 3, kind: output, shape index: {}]  }
   0x1   :  { %v337_v0 = vld [vmem:[%s501_s0 + $0x8] sm:$0xff]  ;;  %v336_v1 = vld [vmem:[%s501_s0] sm:$0xff]  ;;  %v345_v2 = vld [vmem:[%s502_s1 + $0x38] sm:$0xff] }
   0x2   :  { %v31_v3 = vrot.slane %v337_v0, 7  ;;  %v347_v4 = vld [vmem:[%s502_s1 + $0x48] sm:$0xff]  ;;  %v30_v5 = vrot.slane %v336_v1, 7  ;;  %348 = vmatpush.bf16.msra.mxu2 %v345_v2  ;;  %217 = vmatpush.bf16.msra.mxu0 %v345_v2  ;;  %v344_v6 = vld [vmem:[%s502_s1 + $0x30] sm:$0xff]  ;;  %v346_v9 = vld [vmem:[%s502_s1 + $0x40] sm:$0xff] }
   0x3   :  { %242 = vmatpush.bf16.msra.mxu1 %v347_v4 }
   0x4   :  { %v429_v7 = vsel %vm32_vm0, 0, %v31_v3  ;;  %v432_v8 = vsel %vm32_vm0, %v31_v3, 0 }
   0x5   :  { %v51_v10 = vshrl.u32 %v429_v7, 16  ;;  %v53_v11 = vshll.u32 %v429_v7, 16  ;;  %v57_v12 = vshll.u32 %v432_v8, 16  ;;  %v93_v13 = vshrl.u32 %v432_v8, 16 }
   0x6   :  { %8 = vsyncpa [#allocation3], 0  ;;  %vm40_vm2 = vsmask.f32 7424  ;;  %vm69_vm3 = vcmask 1046528   ;;  %v442_v14 = vsel %vm32_vm0, 0, %v30_v5  ;;  %349 = vmatpush.bf16.msra.mxu2 %v344_v6  ;;  %218 = vmatpush.bf16.msra.mxu0 %v344_v6 }
   0x7   :  { %v38_v15 = vsel %vm32_vm0, %v30_v5, 0  ;;  %v90_v16 = vrot.slane %v51_v10, 1  ;;  %v91_v17 = vrot.slane %v53_v11, 2  ;;  %v95_v18 = vrot.slane %v93_v13, 1  ;;  %v343_v20 = vld [vmem:[%s502_s1 + $0x28] sm:$0xff]  ;;  %243 = vmatpush.bf16.msra.mxu1 %v346_v9  ;;  %v342_v35 = vld [vmem:[%s502_s1 + $0x20] sm:$0xff] }
   0x8   :  { %v96_v19 = vrot.slane %v57_v12, 2  ;;  %v55_v21 = vrot.slane %v53_v11, 1  ;;  %v59_v22 = vrot.slane %v57_v12, 1  ;;  %v41_v23 = vshrl.u32 %v442_v14, 16  ;;  %s388_s27 = smov 96   ;;  %s389_s28 = smov 32  }
   0x9   :  { %vm103_vm4 = vcmask 1045504   ;;  %v92_v24 = vor.u32 %v91_v17, %v90_v16  ;;  %v43_v26 = vshll.u32 %v442_v14, 16  ;;  %v47_v27 = vshll.u32 %v38_v15, 16  ;;  %s390_s29 = smov 64   ;;  %v341_v49 = vld [vmem:[%s502_s1 + $0x18] sm:$0xff]  ;;  %v340_v54 = vld [vmem:[%s502_s1 + $0x10] sm:$0xff] }
   0xa   :  { %v97_v25 = vor.u32 %v96_v19, %v95_v18  ;;  %v56_v28 = vor.u32 %v55_v21, %v51_v10  ;;  %v70_v29 = vrot.slane %v442_v14, 1  ;;  %v71_v30 = vrot.slane %v38_v15, 1  ;;  %350 = vmatpush.bf16.msra.mxu2 %v343_v20  ;;  %219 = vmatpush.bf16.msra.mxu0 %v343_v20  ;;  %v339_v55 = vld [vmem:[%s502_s1 + $0x8] sm:$0xff]  ;;  %v338_v56 = vld [vmem:[%s502_s1] sm:$0xff]  ;;  %s274_s15 = sshll.u32 %s504_s3, 4  ;;  %s392_s16 = smov 4   ;;  %s275_s15 = int_to_ptr.hbm [resolvable:$true] %s274_s15 }
   0xb   :  { %v81_v31 = vrot.slane %v41_v23, 1  ;;  %v45_v33 = vrot.slane %v43_v26, 1  ;;  %v82_v34 = vrot.slane %v43_v26, 2  ;;  %vm110_vm5 = vcmask 261120   ;;  %v361_v11 = vld [vmem:[%s503_s2] ss:$0 sm:$0xff] }
   0xc   :  { %v98_v32 = vsel %vm80_vm1, %v92_v24, %v97_v25  ;;  %v60_v36 = vsel %vm40_vm2, %v56_v28, %v59_v22  ;;  %v72_v37 = vsel %vm69_vm3, %v70_v29, %v71_v30  ;;  %v84_v38 = vshrl.u32 %v38_v15, 16  ;;  %s391_s2 = smov [#allocation2]  }
   0xd   :  { %101 = vrot.lane.b32.xlu1 %v98_v32, %s388_s27  ;;  %v87_v39 = vrot.slane %v47_v27, 2  ;;  %63 = vrot.lane.b32.xlu0 %v60_v36, %s389_s28  ;;  %v46_v40 = vor.u32 %v45_v33, %v41_v23  ;;  %v49_v41 = vrot.slane %v47_v27, 1  ;;  %v104_v42 = vrot.slane %v442_v14, 2  ;;  %s272_s12 = sshll.u32 %s391_s2, 4  ;;  %s273_s12 = int_to_ptr.vmem [resolvable:$true] %s272_s12 }
   0xe   :  { %76 = vrot.lane.b32.xlu2 %v72_v37, %s390_s29  ;;  %v105_v43 = vrot.slane %v38_v15, 2  ;;  %v73_v44 = vrot.slane %v429_v7, 1  ;;  %v74_v45 = vrot.slane %v432_v8, 1  ;;  %v83_v46 = vor.u32 %v82_v34, %v81_v31  ;;  %351 = vmatpush.bf16.msra.mxu2 %v342_v35 }
   0xf   :  { %v86_v47 = vrot.slane %v84_v38, 1  ;;  %220 = vmatpush.bf16.msra.mxu0 %v342_v35  ;;  %v50_v51 = vsel %vm40_vm2, %v46_v40, %v49_v41  ;;  %v107_v57 = vrot.slane %v429_v7, 2  ;;  %v108_v58 = vrot.slane %v432_v8, 2 }
  0x10   :  { %v106_v48 = vsel %vm103_vm4, %v104_v42, %v105_v43  ;;  %v75_v52 = vsel %vm69_vm3, %v73_v44, %v74_v45  ;;  %vm115_vm6 = vcmask 523264   ;;  %vm120_vm7 = vcmask 785408  }
  0x11   :  { %v88_v50 = vor.u32 %v87_v39, %v86_v47  ;;  %334 = vmatmul.msk.bf16.vlgmr.msra.gmra.mxu1 %vm110_vm5, %v106_v48  ;;  %v109_v59 = vsel %vm103_vm4, %v107_v57, %v108_v58  ;;  %vm263_vm8 = vcmask 257024  }
  0x12   :  { %352 = vmatpush.bf16.msra.mxu2 %v341_v49 }
  0x13   :  { %v89_v53 = vsel %vm80_vm1, %v83_v46, %v88_v50  ;;  %221 = vmatpush.bf16.msra.mxu0 %v341_v49 }
  0x15   :  { %61 = vrot.lane.b32.xlu1 %v50_v51, %s389_s28  ;;  %78 = vrot.lane.b32.xlu0 %v75_v52, %s390_s29 }
  0x16   :  { %99 = vrot.lane.b32.xlu2 %v89_v53, %s388_s27  ;;  %353 = vmatpush.bf16.msra.mxu2 %v340_v54 }
  0x17   :  { %222 = vmatpush.bf16.msra.mxu0 %v340_v54 }
  0x1a   :  { %354 = vmatpush.bf16.msra.mxu2 %v339_v55 }
  0x1b   :  { %223 = vmatpush.bf16.msra.mxu0 %v339_v55 }
  0x1e   :  { %355 = vmatpush.bf16.msra.mxu2 %v338_v56 }
  0x1f   :  { %224 = vmatpush.bf16.msra.mxu0 %v338_v56 }
  0x21   :  { %335 = vmatmul.msk.bf16.gmra.mxu1 %vm110_vm5, %v109_v59 }
  0x68   :  { %v77_v60 = vpop.permute.xlu2 %76 }
  0x70   :  { %v100_v0 = vpop.permute.xlu2 %99 }
  0x7f   :  { %v102_v61 = vpop.permute.xlu1 %101  ;;  %v64_v62 = vpop.permute.xlu0 %63 }
  0x80   :  { %v114_v1 = vsel %vm110_vm5, %v429_v7, %v64_v62 }
  0x87   :  { %v62_v63 = vpop.permute.xlu1 %61  ;;  %v79_v2 = vpop.permute.xlu0 %78 }
  0x88   :  { %v112_v3 = vsel %vm110_vm5, %v442_v14, %v62_v63  ;;  %v119_v4 = vsel %vm115_vm6, %v114_v1, %v79_v2 }
  0x89   :  { %v117_v5 = vsel %vm115_vm6, %v112_v3, %v77_v60  ;;  %v125_v6 = vsel %vm120_vm7, %v119_v4, %v102_v61 }
  0x8a   :  { %v122_v8 = vsel %vm120_vm7, %v117_v5, %v100_v0  ;;  %230 = vmatmul.bf16.vlgmr.msra.gmra.mxu2 %v125_v6 }
  0x8b   :  { %225 = vmatmul.bf16.vlgmr.msra.gmra.mxu0 %v122_v8 }
  0x8e   :  { %v245_v9 = vpop.f32.mrf.mxu1 }
  0x96   :  { %v247_v10 = vpop.f32.mrf.mxu1 }
  0x9e   :  { %v250_v16 = vpop.f32.mrf.mxu1 }
  0xa6   :  { %v252_v29 = vpop.f32.mrf.mxu1 }
 0x108   :  { %v226_v12 = vpop.f32.mrf.mxu0 }
 0x109   :  { %v227_v13 = vadd.f32 %v361_v11, %v226_v12 }
 0x10b   :  { %v246_v15 = vadd.f32 %v245_v9, %v227_v13 }
 0x10d   :  { %v255_v7 = vmax.f32 %v246_v15, 0.0  ;;  %v231_v17 = vpop.f32.mrf.mxu2 }
 0x10e   :  { %v232_v18 = vadd.f32 %v361_v11, %v231_v17 }
 0x10f   :  { %v259_v14 = vpack.c.bf16 %v255_v7, %v255_v7 }
 0x110   :  { %v228_v19 = vpop.f32.mrf.mxu0  ;;  %v251_v20 = vadd.f32 %v250_v16, %v232_v18 }
 0x111   :  { %264 = vst.msk [vmem:[#allocation2] sm:$0xf] %vm263_vm8, %v259_v14  ;;  %v229_v21 = vadd.f32 %v361_v11, %v228_v19 }
 0x112   :  { %v257_v22 = vmax.f32 %v251_v20, 0.0 }
 0x113   :  { %v248_v23 = vadd.f32 %v247_v10, %v229_v21 }
 0x114   :  { %v261_v24 = vpack.c.bf16 %v257_v22, %v257_v22 }
 0x115   :  { %v256_v25 = vmax.f32 %v248_v23, 0.0  ;;  %v233_v26 = vpop.f32.mrf.mxu2 }
 0x116   :  { %266 = vst.msk [vmem:[#allocation2 + $0x8] sm:$0xf] %vm263_vm8, %v261_v24  ;;  %v234_v28 = vadd.f32 %v361_v11, %v233_v26 }
 0x117   :  { %v260_v27 = vpack.c.bf16 %v256_v25, %v256_v25 }
 0x118   :  { %v253_v30 = vadd.f32 %v252_v29, %v234_v28 }
 0x119   :  { %265 = vst.msk [vmem:[#allocation2 + $0x4] sm:$0xf] %vm263_vm8, %v260_v27 }
 0x11a   :  { %v258_v31 = vmax.f32 %v253_v30, 0.0 }
 0x11c   :  { %v262_v32 = vpack.c.bf16 %v258_v31, %v258_v31 }
 0x11e   :  { %267 = vst.msk [vmem:[#allocation2 + $0xc] sm:$0xf] %vm263_vm8, %v262_v32 }
 0x11f   :  { %280 = dma.vmem_to_hbm [thread:$0]  %s273_s12, 256, %s275_s15, [#allocation3], %s390_s29, %s390_s29, %s392_s16  }
 0x120   :  { %386 = dma.done.wait [#allocation3], 256  }
 0x121   :  { %387 = vsyncadd [#allocation3], 4294967040 }
 0x122   :  { %285 = vsyncpa [#allocation3], 1 }

</bundles_post_ra>
